<compile_context>
chip_gen: v7x
topology: tpu7x:2x2x1
jax: 0.10.0
libtpu: 0.0.40
codegen_flags: <defaults>
</compile_context>

<pallas_src>
import functools

import jax
import jax.numpy as jnp
from jax.experimental import pallas as pl
from jax.experimental.pallas import tpu as pltpu

INPUT_SIZE = 2
HIDDEN_SIZE = 100
OUTPUT_SIZE = 3

_LANE = 128
_SUBLANE = 8
HIDDEN_PAD = ((HIDDEN_SIZE + _LANE - 1) // _LANE) * _LANE           # 128
OUT_ROWS = ((OUTPUT_SIZE + _SUBLANE - 1) // _SUBLANE) * _SUBLANE    # 8


def mlp_kernel(x_ref, w1_ref, b1_ref, w2_ref, b2_ref, w3t_ref, b3t_ref, o_ref):
    """Fused MLP forward for one batch tile.

    Layer 1 (K = INPUT_SIZE = 2) would waste a 128/256-deep MXU pass, so it is
    two broadcast FMAs on the VPU. Layers 2/3 run on the MXU with bf16
    operands and f32 accumulation. Layer 3 is computed transposed
    (out_t = w3^T @ h2^T, the h2 transpose is a cheap XLU op on an otherwise
    idle slot) so the HBM store is a tiny lane-dense (8, tile_n) slab instead
    of a 128-lane-padded (tile_n, 128) one.
    """
    x = x_ref[...]                                        # [tile_n, 2] f32

    # ---- layer 1 (VPU): h1 = b1 + sum_k x[:, k] * w1[k, :] ----
    h1 = b1_ref[...]                                      # [1, HIDDEN_PAD], broadcasts up
    for k in range(x_ref.shape[1]):                       # static unroll (2 iters)
        h1 = h1 + x[:, k:k + 1] * w1_ref[k:k + 1, :]
    h1 = jnp.maximum(h1, 0.0)                             # ReLU, [tile_n, HIDDEN_PAD]

    # ---- layer 2 (MXU, bf16 x bf16 -> f32 accumulate) ----
    h2 = jnp.dot(h1.astype(jnp.bfloat16), w2_ref[...],
                 preferred_element_type=jnp.float32) + b2_ref[...]
    h2 = jnp.maximum(h2, 0.0)                             # ReLU, [tile_n, HIDDEN_PAD]

    # ---- layer 3 (MXU, transposed output) ----
    # out_t[o, n] = sum_h w3t[o, h] * h2[n, h]; transpose h2 in f32 (basic XLU
    # path on every generation), then pack to bf16 for the MXU.
    out_t = jnp.dot(w3t_ref[...], h2.T.astype(jnp.bfloat16),
                    preferred_element_type=jnp.float32) + b3t_ref[...]

    o_ref[...] = out_t.astype(o_ref.dtype)                # [OUT_ROWS, tile_n] lane-dense store


def _round_up(v, m):
    return ((v + m - 1) // m) * m


def _pick_tile_n(n):
    """Batch tile in rows, always a multiple of 128 (lane dim of the transposed
    output block). Small batches: a single grid step (each step costs ~0.35us
    of fixed overhead on one TensorCore). Large batches: an even number of
    <=2048-row tiles so v7x's two TensorCores get a balanced share of the
    'parallel' axis. VMEM is never the constraint (~1-2 MB working set)."""
    n128 = _round_up(max(n, 1), _LANE)
    if n128 <= 1024:
        return n128
    steps = max(2, pl.cdiv(n128, 2048))
    if steps % 2:
        steps += 1
    return _round_up(pl.cdiv(n128, steps), _LANE)


def prepare_params(w1, b1, w2, b2, w3, b3):
    """One-time padding / casting of the parameters into the kernel layout.

    Weights come in as [in, out] (transposed vs PyTorch), biases as [1, out].
    Hoisted out of the per-call hot path: at small batch the per-call pads and
    casts used to dwarf the kernel itself.
    """
    f32 = jnp.float32
    w1p = jnp.pad(jnp.asarray(w1, f32),
                  ((0, 0), (0, HIDDEN_PAD - HIDDEN_SIZE)))
    b1p = jnp.pad(jnp.asarray(b1, f32).reshape(1, -1),
                  ((0, 0), (0, HIDDEN_PAD - HIDDEN_SIZE)))
    w2p = jnp.pad(jnp.asarray(w2, f32),
                  ((0, HIDDEN_PAD - HIDDEN_SIZE), (0, HIDDEN_PAD - HIDDEN_SIZE))
                  ).astype(jnp.bfloat16)
    b2p = jnp.pad(jnp.asarray(b2, f32).reshape(1, -1),
                  ((0, 0), (0, HIDDEN_PAD - HIDDEN_SIZE)))
    w3tp = jnp.pad(jnp.asarray(w3, f32).T,                       # [3, 100] -> [8, 128]
                   ((0, OUT_ROWS - OUTPUT_SIZE), (0, HIDDEN_PAD - HIDDEN_SIZE))
                   ).astype(jnp.bfloat16)
    b3tp = jnp.pad(jnp.asarray(b3, f32).reshape(-1, 1),          # [3, 1] -> [8, 1]
                   ((0, OUT_ROWS - OUTPUT_SIZE), (0, 0)))
    return (w1p, b1p, w2p, b2p, w3tp, b3tp)


@functools.partial(jax.jit, static_argnames=("tile_n",))
def _mlp_forward_impl(x, params, *, tile_n):
    w1p, b1p, w2p, b2p, w3tp, b3tp = params
    n, d_in = x.shape
    n_pad = _round_up(max(n, 1), tile_n)
    xp = jnp.pad(x.astype(jnp.float32), ((0, n_pad - n), (0, 0)))

    full = lambda a: pl.BlockSpec(a.shape, lambda i: (0, 0))      # resident params

    out_t = pl.pallas_call(
        mlp_kernel,
        out_shape=jax.ShapeDtypeStruct((OUT_ROWS, n_pad), jnp.float32),
        grid=(n_pad // tile_n,),
        in_specs=[
            pl.BlockSpec((tile_n, d_in), lambda i: (i, 0)),       # x tile over batch
            full(w1p), full(b1p),
            full(w2p), full(b2p),
            full(w3tp), full(b3tp),
        ],
        out_specs=pl.BlockSpec((OUT_ROWS, tile_n), lambda i: (0, i)),
        compiler_params=pltpu.CompilerParams(
            dimension_semantics=("parallel",),
            vmem_limit_bytes=32 * 1024 * 1024,
        ),
    )(xp, w1p, b1p, w2p, b2p, w3tp, b3tp)

    return out_t[:OUTPUT_SIZE, :n].T                              # [N, 3] f32


def mlp_forward(x, params, *, tile_n=None):
    """x: [N, INPUT_SIZE]; params from prepare_params. Returns [N, OUTPUT_SIZE] f32."""
    if tile_n is None:
        tile_n = _pick_tile_n(x.shape[0])
    assert tile_n % _LANE == 0
    return _mlp_forward_impl(x, params, tile_n=tile_n)


def init_linear(key, fan_in, fan_out):
    """Deterministic init mimicking PyTorch nn.Linear default (uniform +-1/sqrt(fan_in)).
    Weight is [in, out] (transposed vs PyTorch), bias is [1, out]."""
    kw, kb = jax.random.split(key)
    bound = 1.0 / jnp.sqrt(float(fan_in))
    w = jax.random.uniform(kw, (fan_in, fan_out), jnp.float32, -bound, bound)
    b = jax.random.uniform(kb, (1, fan_out), jnp.float32, -bound, bound)
    return w, b


def reference_forward(x, w1, b1, w2, b2, w3, b3):
    h1 = jnp.maximum(x @ w1 + b1, 0.0)
    h2 = jnp.maximum(h1 @ w2 + b2, 0.0)
    return h2 @ w3 + b3


if __name__ == "__main__":
    key = jax.random.PRNGKey(0)
    k_x, k1, k2, k3 = jax.random.split(key, 4)

    batch = 200  # not a multiple of 128 -> exercises the padded/ragged batch path
    x = jax.random.normal(k_x, (batch, INPUT_SIZE), jnp.float32)

    w1, b1 = init_linear(k1, INPUT_SIZE, HIDDEN_SIZE)
    w2, b2 = init_linear(k2, HIDDEN_SIZE, HIDDEN_SIZE)
    w3, b3 = init_linear(k3, HIDDEN_SIZE, OUTPUT_SIZE)

    params = prepare_params(w1, b1, w2, b2, w3, b3)   # one-time pad / bf16 cast
    out = mlp_forward(x, params)
    out = jax.block_until_ready(out)

    ref = reference_forward(x, w1, b1, w2, b2, w3, b3)
    assert out.shape == (batch, OUTPUT_SIZE)
    # Layers 2/3 use bf16 MXU operands (f32 accumulation) -> tolerance loosened
    # from 1e-4 to 3e-2 per the review.
    assert jnp.allclose(out, ref, atol=3e-2, rtol=3e-2), "mismatch vs reference"

    # TODO(synk): MSELoss / Adam step (MLP.L) are training-side and not part of forward.
    print("KERNEL_OK")
</pallas_src>

<mosaic_0001>
module attributes {stable_mosaic.version = 11 : i64} {
  func.func @mlp_kernel(%arg0: i32, %arg1: memref<256x2xf32, #tpu.memory_space<vmem>>, %arg2: memref<2x128xf32, #tpu.memory_space<vmem>>, %arg3: memref<1x128xf32, #tpu.memory_space<vmem>>, %arg4: memref<128x128xbf16, #tpu.memory_space<vmem>>, %arg5: memref<1x128xf32, #tpu.memory_space<vmem>>, %arg6: memref<8x128xbf16, #tpu.memory_space<vmem>>, %arg7: memref<8x1xf32, #tpu.memory_space<vmem>>, %arg8: memref<8x256xf32, #tpu.memory_space<vmem>>) attributes {dimension_semantics = [#tpu.dimension_semantics<parallel>], iteration_bounds = array<i64: 1>, scalar_prefetch = 0 : i64, scratch_operands = 0 : i64, tpu.core_type = #tpu.core_type<tc>, window_params = [{transform_indices = @transform_0, window_bounds = array<i64: 256, 2>}, {pipeline_mode = #tpu.pipeline_mode<synchronous>, transform_indices = @transform_1, window_bounds = array<i64: 2, 128>}, {pipeline_mode = #tpu.pipeline_mode<synchronous>, transform_indices = @transform_2, window_bounds = array<i64: 1, 128>}, {pipeline_mode = #tpu.pipeline_mode<synchronous>, transform_indices = @transform_3, window_bounds = array<i64: 128, 128>}, {pipeline_mode = #tpu.pipeline_mode<synchronous>, transform_indices = @transform_4, window_bounds = array<i64: 1, 128>}, {pipeline_mode = #tpu.pipeline_mode<synchronous>, transform_indices = @transform_5, window_bounds = array<i64: 8, 128>}, {pipeline_mode = #tpu.pipeline_mode<synchronous>, transform_indices = @transform_6, window_bounds = array<i64: 8, 1>}, {transform_indices = @transform_7, window_bounds = array<i64: 8, 256>}]} {
    %c0 = arith.constant 0 : index
    %c0_0 = arith.constant 0 : index
    %0 = vector.load %arg1[%c0, %c0_0] : memref<256x2xf32, #tpu.memory_space<vmem>>, vector<256x2xf32>
    %c0_1 = arith.constant 0 : index
    %c0_2 = arith.constant 0 : index
    %1 = vector.load %arg3[%c0_1, %c0_2] : memref<1x128xf32, #tpu.memory_space<vmem>>, vector<1x128xf32>
    %2 = vector.extract_strided_slice %0 {offsets = [0, 0], sizes = [256, 1], strides = [1, 1]} : vector<256x2xf32> to vector<256x1xf32>
    %c0_3 = arith.constant 0 : index
    %c0_4 = arith.constant 0 : index
    %3 = vector.load %arg2[%c0_3, %c0_4] : memref<2x128xf32, #tpu.memory_space<vmem>>, vector<1x128xf32>
    %4 = vector.broadcast %2 : vector<256x1xf32> to vector<256x128xf32>
    %5 = vector.broadcast %3 : vector<1x128xf32> to vector<256x128xf32>
    %6 = arith.mulf %4, %5 : vector<256x128xf32>
    %7 = vector.broadcast %1 : vector<1x128xf32> to vector<256x128xf32>
    %8 = arith.addf %7, %6 : vector<256x128xf32>
    %9 = vector.extract_strided_slice %0 {offsets = [0, 1], sizes = [256, 1], strides = [1, 1]} : vector<256x2xf32> to vector<256x1xf32>
    %c1 = arith.constant 1 : index
    %c0_5 = arith.constant 0 : index
    %10 = vector.load %arg2[%c1, %c0_5] : memref<2x128xf32, #tpu.memory_space<vmem>>, vector<1x128xf32>
    %11 = vector.broadcast %9 : vector<256x1xf32> to vector<256x128xf32>
    %12 = vector.broadcast %10 : vector<1x128xf32> to vector<256x128xf32>
    %13 = arith.mulf %11, %12 : vector<256x128xf32>
    %14 = arith.addf %8, %13 : vector<256x128xf32>
    %cst = arith.constant 0.000000e+00 : f32
    %15 = vector.broadcast %cst : f32 to vector<256x128xf32>
    %16 = arith.maximumf %14, %15 : vector<256x128xf32>
    %17 = arith.truncf %16 : vector<256x128xf32> to vector<256x128xbf16>
    %c0_6 = arith.constant 0 : index
    %c0_7 = arith.constant 0 : index
    %18 = vector.load %arg4[%c0_6, %c0_7] : memref<128x128xbf16, #tpu.memory_space<vmem>>, vector<128x128xbf16>
    %cst_8 = arith.constant dense<0.000000e+00> : vector<256x128xf32>
    %19 = tpu.matmul %17, %18, %cst_8 {dimension_numbers = #tpu.dot_dimension_numbers<[1], [0], [0], [1], [0, 0, 1, 1], [], []>} : vector<256x128xbf16>, vector<128x128xbf16>, vector<256x128xf32> -> vector<256x128xf32>
    %c0_9 = arith.constant 0 : index
    %c0_10 = arith.constant 0 : index
    %20 = vector.load %arg5[%c0_9, %c0_10] : memref<1x128xf32, #tpu.memory_space<vmem>>, vector<1x128xf32>
    %21 = vector.broadcast %20 : vector<1x128xf32> to vector<256x128xf32>
    %22 = arith.addf %19, %21 : vector<256x128xf32>
    %cst_11 = arith.constant 0.000000e+00 : f32
    %23 = vector.broadcast %cst_11 : f32 to vector<256x128xf32>
    %24 = arith.maximumf %22, %23 : vector<256x128xf32>
    %c0_12 = arith.constant 0 : index
    %c0_13 = arith.constant 0 : index
    %25 = vector.load %arg6[%c0_12, %c0_13] : memref<8x128xbf16, #tpu.memory_space<vmem>>, vector<8x128xbf16>
    %26 = tpu.transpose %24, [1, 0] : vector<256x128xf32> -> vector<128x256xf32>
    %27 = arith.truncf %26 : vector<128x256xf32> to vector<128x256xbf16>
    %cst_14 = arith.constant dense<0.000000e+00> : vector<8x256xf32>
    %28 = tpu.matmul %25, %27, %cst_14 {dimension_numbers = #tpu.dot_dimension_numbers<[1], [0], [0], [1], [0, 0, 1, 1], [], []>} : vector<8x128xbf16>, vector<128x256xbf16>, vector<8x256xf32> -> vector<8x256xf32>
    %c0_15 = arith.constant 0 : index
    %c0_16 = arith.constant 0 : index
    %29 = vector.load %arg7[%c0_15, %c0_16] : memref<8x1xf32, #tpu.memory_space<vmem>>, vector<8x1xf32>
    %30 = vector.broadcast %29 : vector<8x1xf32> to vector<8x256xf32>
    %31 = arith.addf %28, %30 : vector<8x256xf32>
    %c0_17 = arith.constant 0 : index
    %c0_18 = arith.constant 0 : index
    %32 = vector.load %arg8[%c0_17, %c0_18] : memref<8x256xf32, #tpu.memory_space<vmem>>, vector<8x256xf32>
    tpu.vector_store %arg8[%c0_17, %c0_18], %31 {strides = array<i32>} : memref<8x256xf32, #tpu.memory_space<vmem>>, vector<8x256xf32>,
    return
  }
  func.func @transform_0(%arg0: i32) -> (i32, i32) {
    %c0_i32 = arith.constant 0 : i32
    %c0_i32_0 = arith.constant 0 : i32
    return %arg0, %c0_i32 : i32, i32
  }
  func.func @transform_1(%arg0: i32) -> (i32, i32) {
    %c0_i32 = arith.constant 0 : i32
    %c0_i32_0 = arith.constant 0 : i32
    %c0_i32_1 = arith.constant 0 : i32
    return %c0_i32, %c0_i32_0 : i32, i32
  }
  func.func @transform_2(%arg0: i32) -> (i32, i32) {
    %c0_i32 = arith.constant 0 : i32
    %c0_i32_0 = arith.constant 0 : i32
    %c0_i32_1 = arith.constant 0 : i32
    return %c0_i32, %c0_i32_0 : i32, i32
  }
  func.func @transform_3(%arg0: i32) -> (i32, i32) {
    %c0_i32 = arith.constant 0 : i32
    %c0_i32_0 = arith.constant 0 : i32
    %c0_i32_1 = arith.constant 0 : i32
    return %c0_i32, %c0_i32_0 : i32, i32
  }
  func.func @transform_4(%arg0: i32) -> (i32, i32) {
    %c0_i32 = arith.constant 0 : i32
    %c0_i32_0 = arith.constant 0 : i32
    %c0_i32_1 = arith.constant 0 : i32
    return %c0_i32, %c0_i32_0 : i32, i32
  }
  func.func @transform_5(%arg0: i32) -> (i32, i32) {
    %c0_i32 = arith.constant 0 : i32
    %c0_i32_0 = arith.constant 0 : i32
    %c0_i32_1 = arith.constant 0 : i32
    return %c0_i32, %c0_i32_0 : i32, i32
  }
  func.func @transform_6(%arg0: i32) -> (i32, i32) {
    %c0_i32 = arith.constant 0 : i32
    %c0_i32_0 = arith.constant 0 : i32
    %c0_i32_1 = arith.constant 0 : i32
    return %c0_i32, %c0_i32_0 : i32, i32
  }
  func.func @transform_7(%arg0: i32) -> (i32, i32) {
    %c0_i32 = arith.constant 0 : i32
    %c0_i32_0 = arith.constant 0 : i32
    return %c0_i32, %arg0 : i32, i32
  }
}

</mosaic_0001>

<bundles_post_ra>
// kernel: _mlp_forward_impl.1
= control target key start
LH: loop header
LB: loop body
LE: loop exit
PB: predicated region body
PF: predicated region fallthrough
CT: control target
= control target key end

     0   :  { %v1163_v0 = vmov 0   ;;  %v1164_v6 = vmov 1   ;;  %s1567_s0 = inlined_call_operand.vmem [shape: f32[256,2], index: 0, kind: input, shape index: {}]   ;;  %s1568_s3 = inlined_call_operand.vmem [shape: bf16[128,128], index: 3, kind: input, shape index: {}]   ;;  %s1569_s1 = inlined_call_operand.vmem [shape: f32[2,128], index: 1, kind: input, shape index: {}]   ;;  %s1570_s2 = inlined_call_operand.vmem [shape: f32[1,128], index: 2, kind: input, shape index: {}]   ;;  %s1571_s4 = inlined_call_operand.vmem [shape: f32[1,128], index: 4, kind: input, shape index: {}]   ;;  %s1572_s6 = inlined_call_operand.vmem [shape: f32[8,1], index: 6, kind: input, shape index: {}]   ;;  %s1573_s5 = inlined_call_operand.vmem [shape: bf16[8,128], index: 5, kind: input, shape index: {}]   ;;  %s1574_s7 = inlined_call_operand.vmem [shape: f32[8,256], index: 7, kind: output, shape index: {}]  }
   0x1   :  { %1025 = vset.pattern.permute.xlu1 %v1163_v0  ;;  %1024 = vset.pattern.permute.xlu0 %v1163_v0  ;;  %v29_v1 = vld [vmem:[%s1567_s0 + $0x10] sm:$0xff]  ;;  %v27_v2 = vld [vmem:[%s1567_s0] sm:$0xff]  ;;  %v30_v3 = vld [vmem:[%s1567_s0 + $0x18] sm:$0xff] }
   0x2   :  { %73 = vperm.xlu1 %1025, %v29_v1   ;;  %63 = vperm.xlu0 %1024, %v27_v2   ;;  %v28_v4 = vld [vmem:[%s1567_s0 + $0x8] sm:$0xff]  ;;  %v31_v9 = vld [vmem:[%s1567_s0 + $0x20] sm:$0xff]  ;;  %v33_v12 = vld [vmem:[%s1567_s0 + $0x30] sm:$0xff] }
   0x3   :  { %923 = vmatprep.mubr.bf16.mxu1 %v1163_v0  ;;  %v32_v5 = vld [vmem:[%s1567_s0 + $0x28] sm:$0xff]  ;;  %v1155_v11 = vld [vmem:[%s1568_s3] sm:$0xff]   ;;  %v34_v15 = vld [vmem:[%s1567_s0 + $0x38] sm:$0xff] }
   0x4   :  { %v36_v7 = vld [vmem:[%s1567_s0 + $0x48] sm:$0xff]  ;;  %974 = vmatprep.subr.bf16.mxu0 %v1155_v11  ;;  %v1157_v16 = vld [vmem:[%s1568_s3 + $0x10] sm:$0xff]   ;;  %v1158_v18 = vld [vmem:[%s1568_s3 + $0x18] sm:$0xff]  }
   0x5   :  { %v1230_v8 = vld [vmem:[%s1567_s0 + $0x68] sm:$0xff]  ;;  %975 = vmatpush3.bf16.msra.mxu0 %v1155_v11  ;;  %v1159_v20 = vld [vmem:[%s1568_s3 + $0x20] sm:$0xff]   ;;  %v1161_v23 = vld [vmem:[%s1568_s3 + $0x30] sm:$0xff]  }
   0x6   :  { %78 = vperm.xlu1 %1025, %v30_v3   ;;  %68 = vperm.xlu0 %1024, %v28_v4   ;;  %v1238_v10 = vld [vmem:[%s1567_s0 + $0x88] sm:$0xff]  ;;  %v35_v22 = vld [vmem:[%s1567_s0 + $0x40] sm:$0xff]  ;;  %v37_v24 = vld [vmem:[%s1567_s0 + $0x50] sm:$0xff] }
   0x7   :  { %v1156_v13 = vld [vmem:[%s1568_s3 + $0x8] sm:$0xff]   ;;  %v1162_v25 = vld [vmem:[%s1568_s3 + $0x38] sm:$0xff]   ;;  %v39_v27 = vld [vmem:[%s1567_s0 + $0x60] sm:$0xff] }
   0x8   :  { %v1255_v14 = vld [vmem:[%s1567_s0 + $0xa8] sm:$0xff]  ;;  %976 = vmatprep.subr.bf16.mxu0 %v1156_v13  ;;  %v38_v26 = vld [vmem:[%s1567_s0 + $0x58] sm:$0xff]  ;;  %v41_v29 = vld [vmem:[%s1567_s0 + $0x70] sm:$0xff] }
   0x9   :  { %977 = vmatpush3.bf16.msra.mxu0 %v1156_v13  ;;  %v1267_v17 = vld [vmem:[%s1567_s0 + $0xc8] sm:$0xff]  ;;  %v42_v28 = vld [vmem:[%s1567_s0 + $0x78] sm:$0xff]  ;;  %v43_v30 = vld [vmem:[%s1567_s0 + $0x80] sm:$0xff] }
   0xa   :  { %1026 = vset.pattern.permute.xlu1 %v1164_v6  ;;  %88 = vperm.xlu0 %1024, %v32_v5   ;;  %v1276_v19 = vld [vmem:[%s1567_s0 + $0xe8] sm:$0xff]  ;;  %v46_v31 = vld [vmem:[%s1567_s0 + $0x98] sm:$0xff]  ;;  %v47_v32 = vld [vmem:[%s1567_s0 + $0xa0] sm:$0xff] }
   0xb   :  { %301 = vperm.xlu1 %1026, %v28_v4   ;;  %978 = vmatprep.subr.bf16.mxu0 %v1157_v16  ;;  %v1160_v21 = vld [vmem:[%s1568_s3 + $0x28] sm:$0xff]   ;;  %v50_v33 = vld [vmem:[%s1567_s0 + $0xb8] sm:$0xff]  ;;  %v51_v34 = vld [vmem:[%s1567_s0 + $0xc0] sm:$0xff] }
   0xc   :  { %v45_v35 = vld [vmem:[%s1567_s0 + $0x90] sm:$0xff]  ;;  %v54_v36 = vld [vmem:[%s1567_s0 + $0xd8] sm:$0xff]  ;;  %v55_v37 = vld [vmem:[%s1567_s0 + $0xe0] sm:$0xff] }
   0xd   :  { %979 = vmatpush3.bf16.msra.mxu0 %v1157_v16  ;;  %v58_v38 = vld [vmem:[%s1567_s0 + $0xf8] sm:$0xff]  ;;  %v49_v39 = vld [vmem:[%s1567_s0 + $0xb0] sm:$0xff]  ;;  %v1374_v56 = vld [vmem:[%s1569_s1] ss:$0 sm:$0xff] }
   0xe   :  { %108 = vperm.xlu0 %1024, %v36_v7   ;;  %980 = vmatprep.subr.bf16.mxu0 %v1158_v18  ;;  %v53_v42 = vld [vmem:[%s1567_s0 + $0xd0] sm:$0xff]  ;;  %v1382_v59 = vld [vmem:[%s1569_s1 + $0x1] ss:$0 sm:$0xff]  ;;  %v1387_v61 = vld [vmem:[%s1570_s2] ss:$0 sm:$0xff] }
   0xf   :  { %305 = vperm.xlu1 %1026, %v29_v1   ;;  %v57_v54 = vld [vmem:[%s1567_s0 + $0xf0] sm:$0xff] }
  0x11   :  { %981 = vmatpush3.bf16.msra.mxu0 %v1158_v18 }
  0x12   :  { %128 = vperm.xlu0 %1024, %v1230_v8   ;;  %982 = vmatprep.subr.bf16.mxu0 %v1159_v20 }
  0x13   :  { %1027 = vset.pattern.permute.xlu1 %v1163_v0 }
  0x14   :  { %83 = vperm.xlu1 %1027, %v31_v9  }
  0x15   :  { %983 = vmatpush3.bf16.msra.mxu0 %v1159_v20 }
  0x16   :  { %148 = vperm.xlu0 %1024, %v1238_v10   ;;  %984 = vmatprep.subr.bf16.mxu0 %v1160_v21 }
  0x18   :  { %93 = vperm.xlu1 %1027, %v33_v12  }
  0x19   :  { %985 = vmatpush3.bf16.msra.mxu0 %v1160_v21 }
  0x1a   :  { %168 = vperm.xlu0 %1024, %v1255_v14   ;;  %986 = vmatprep.subr.bf16.mxu0 %v1161_v23 }
  0x1c   :  { %98 = vperm.xlu1 %1027, %v34_v15  }
  0x1d   :  { %987 = vmatpush3.bf16.msra.mxu0 %v1161_v23 }
  0x1e   :  { %188 = vperm.xlu0 %1024, %v1267_v17   ;;  %988 = vmatprep.subr.bf16.mxu0 %v1162_v25 }
  0x20   :  { %1028 = vset.pattern.permute.xlu1 %v1164_v6 }
  0x21   :  { %317 = vperm.xlu1 %1028, %v32_v5   ;;  %989 = vmatpush3.bf16.msra.mxu0 %v1162_v25 }
  0x22   :  { %208 = vperm.xlu0 %1024, %v1276_v19  }
  0x25   :  { %321 = vperm.xlu1 %1028, %v33_v12  }
  0x26   :  { %1040 = vset.pattern.permute.xlu0 %v1164_v6 }
  0x27   :  { %297 = vperm.xlu0 %1040, %v27_v2  }
  0x29   :  { %1029 = vset.pattern.permute.xlu1 %v1163_v0 }
  0x2a   :  { %103 = vperm.xlu1 %1029, %v35_v22  }
  0x2b   :  { %309 = vperm.xlu0 %1040, %v30_v3  }
  0x2e   :  { %113 = vperm.xlu1 %1029, %v37_v24  }
  0x2f   :  { %313 = vperm.xlu0 %1040, %v31_v9  }
  0x32   :  { %118 = vperm.xlu1 %1029, %v38_v26  }
  0x33   :  { %325 = vperm.xlu0 %1040, %v34_v15  }
  0x36   :  { %1030 = vset.pattern.permute.xlu1 %v1164_v6 }
  0x37   :  { %333 = vperm.xlu1 %1030, %v36_v7   ;;  %329 = vperm.xlu0 %1040, %v35_v22  }
  0x3b   :  { %337 = vperm.xlu1 %1030, %v37_v24   ;;  %341 = vperm.xlu0 %1040, %v38_v26  }
  0x3f   :  { %1031 = vset.pattern.permute.xlu1 %v1163_v0  ;;  %345 = vperm.xlu0 %1040, %v39_v27  }
  0x40   :  { %123 = vperm.xlu1 %1031, %v39_v27  }
  0x43   :  { %357 = vperm.xlu0 %1040, %v42_v28  }
  0x44   :  { %133 = vperm.xlu1 %1031, %v41_v29  }
  0x47   :  { %361 = vperm.xlu0 %1040, %v43_v30  }
  0x48   :  { %138 = vperm.xlu1 %1031, %v42_v28  }
  0x4b   :  { %373 = vperm.xlu0 %1040, %v46_v31  }
  0x4c   :  { %1032 = vset.pattern.permute.xlu1 %v1164_v6 }
  0x4d   :  { %349 = vperm.xlu1 %1032, %v1230_v8  }
  0x4f   :  { %377 = vperm.xlu0 %1040, %v47_v32  }
  0x51   :  { %353 = vperm.xlu1 %1032, %v41_v29  }
  0x53   :  { %389 = vperm.xlu0 %1040, %v50_v33  }
  0x55   :  { %1033 = vset.pattern.permute.xlu1 %v1163_v0 }
  0x56   :  { %143 = vperm.xlu1 %1033, %v43_v30  }
  0x57   :  { %393 = vperm.xlu0 %1040, %v51_v34  }
  0x5a   :  { %153 = vperm.xlu1 %1033, %v45_v35  }
  0x5b   :  { %405 = vperm.xlu0 %1040, %v54_v36  }
  0x5e   :  { %158 = vperm.xlu1 %1033, %v46_v31  }
  0x5f   :  { %409 = vperm.xlu0 %1040, %v55_v37  }
  0x62   :  { %1034 = vset.pattern.permute.xlu1 %v1164_v6 }
  0x63   :  { %365 = vperm.xlu1 %1034, %v1238_v10   ;;  %421 = vperm.xlu0 %1040, %v58_v38  }
  0x67   :  { %369 = vperm.xlu1 %1034, %v45_v35   ;;  %1154 = vset.pattern.permute.xlu0 %v1163_v0 }
  0x6b   :  { %1035 = vset.pattern.permute.xlu1 %v1163_v0 }
  0x6c   :  { %163 = vperm.xlu1 %1035, %v47_v32  }
  0x70   :  { %173 = vperm.xlu1 %1035, %v49_v39  }
  0x74   :  { %178 = vperm.xlu1 %1035, %v50_v33  }
  0x78   :  { %1036 = vset.pattern.permute.xlu1 %v1164_v6 }
  0x79   :  { %381 = vperm.xlu1 %1036, %v1255_v14  }
  0x7d   :  { %385 = vperm.xlu1 %1036, %v49_v39  }
  0x81   :  { %v74_v40 = vpop.permute.xlu1 %73  ;;  %1037 = vset.pattern.permute.xlu1 %v1163_v0  ;;  %v64_v41 = vpop.permute.xlu0 %63 }
  0x82   :  { %183 = vperm.xlu1 %1037, %v51_v34   ;;  %v225_v62 = vmul.f32 %v1374_v56, %v64_v41  ;;  %v227_v2 = vmul.f32 %v1374_v56, %v74_v40 }
  0x84   :  { %v263_v4 = vadd.f32 %v1387_v61, %v225_v62  ;;  %v265_v12 = vadd.f32 %v1387_v61, %v227_v2 }
  0x85   :  { %v79_v43 = vpop.permute.xlu1 %78  ;;  %v69_v44 = vpop.permute.xlu0 %68 }
  0x86   :  { %193 = vperm.xlu1 %1037, %v53_v42   ;;  %v226_v58 = vmul.f32 %v1374_v56, %v69_v44  ;;  %v228_v5 = vmul.f32 %v1374_v56, %v79_v43 }
  0x88   :  { %v266_v14 = vadd.f32 %v1387_v61, %v228_v5 }
  0x89   :  { %v89_v45 = vpop.permute.xlu0 %88 }
  0x8a   :  { %198 = vperm.xlu1 %1037, %v54_v36   ;;  %v302_v46 = vpop.permute.xlu1 %301  ;;  %v230_v7 = vmul.f32 %v1374_v56, %v89_v45 }
  0x8b   :  { %v429_v1 = vmul.f32 %v1382_v59, %v302_v46 }
  0x8c   :  { %v268_v15 = vadd.f32 %v1387_v61, %v230_v7 }
  0x8d   :  { %v1357_v47 = vpop.permute.xlu0 %108 }
  0x8e   :  { %1038 = vset.pattern.permute.xlu1 %v1164_v6  ;;  %v306_v48 = vpop.permute.xlu1 %305  ;;  %v234_v39 = vmul.f32 %v1374_v56, %v1357_v47 }
  0x8f   :  { %397 = vperm.xlu1 %1038, %v1267_v17   ;;  %v430_v8 = vmul.f32 %v1382_v59, %v306_v48 }
  0x91   :  { %v1361_v49 = vpop.permute.xlu0 %128  ;;  %v462_v16 = vadd.f32 %v430_v8, %v265_v12 }
  0x93   :  { %401 = vperm.xlu1 %1038, %v53_v42   ;;  %v84_v50 = vpop.permute.xlu1 %83  ;;  %v494_v27 = vmax.f32 %v462_v16, 0.0 }
  0x95   :  { %v1363_v51 = vpop.permute.xlu0 %148 }
  0x97   :  { %1039 = vset.pattern.permute.xlu1 %v1163_v0  ;;  %v94_v52 = vpop.permute.xlu1 %93  ;;  %v264_v0 = vadd.f32 %v1387_v61, %v226_v58 }
  0x98   :  { %203 = vperm.xlu1 %1039, %v55_v37   ;;  %v231_v23 = vmul.f32 %v1374_v56, %v94_v52  ;;  %v272_v52 = vadd.f32 %v1387_v61, %v234_v39 }
  0x99   :  { %v1366_v53 = vpop.permute.xlu0 %168  ;;  %v461_v10 = vadd.f32 %v429_v1, %v264_v0 }
  0x9a   :  { %v269_v35 = vadd.f32 %v1387_v61, %v231_v23 }
  0x9b   :  { %v99_v55 = vpop.permute.xlu1 %98  ;;  %v493_v18 = vmax.f32 %v461_v10, 0.0 }
  0x9c   :  { %213 = vperm.xlu1 %1039, %v57_v54   ;;  %v232_v28 = vmul.f32 %v1374_v56, %v99_v55 }
  0x9d   :  { %v1376_v57 = vpop.permute.xlu0 %188 }
  0x9e   :  { %v270_v40 = vadd.f32 %v1387_v61, %v232_v28 }
  0xa0   :  { %218 = vperm.xlu1 %1039, %v58_v38   ;;  %v318_v60 = vpop.permute.xlu1 %317 }
  0xa1   :  { %v1390_v63 = vpop.permute.xlu0 %208  ;;  %v433_v20 = vmul.f32 %v1382_v59, %v318_v60 }
  0xa3   :  { %v465_v32 = vadd.f32 %v433_v20, %v268_v15 }
  0xa4   :  { %1041 = vset.pattern.permute.xlu1 %v1164_v6  ;;  %v322_v3 = vpop.permute.xlu1 %321 }
  0xa5   :  { %413 = vperm.xlu1 %1041, %v1276_v19   ;;  %v229_v19 = vmul.f32 %v1374_v56, %v84_v50  ;;  %v434_v29 = vmul.f32 %v1382_v59, %v322_v3  ;;  %v497_v43 = vmax.f32 %v465_v32, 0.0 }
  0xa6   :  { %v298_v9 = vpop.permute.xlu0 %297 }
  0xa7   :  { %v428_v11 = vmul.f32 %v1382_v59, %v298_v9  ;;  %v267_v31 = vadd.f32 %v1387_v61, %v229_v19  ;;  %v466_v41 = vadd.f32 %v434_v29, %v269_v35 }
  0xa9   :  { %417 = vperm.xlu1 %1041, %v57_v54   ;;  %v104_v13 = vpop.permute.xlu1 %103  ;;  %v460_v6 = vadd.f32 %v428_v11, %v263_v4  ;;  %v498_v54 = vmax.f32 %v466_v41, 0.0 }
  0xaa   :  { %v310_v17 = vpop.permute.xlu0 %309  ;;  %v233_v44 = vmul.f32 %v1374_v56, %v104_v13 }
  0xab   :  { %v431_v21 = vmul.f32 %v1382_v59, %v310_v17  ;;  %v492_v22 = vmax.f32 %v460_v6, 0.0 }
  0xac   :  { %v271_v62 = vadd.f32 %v1387_v61, %v233_v44 }
  0xad   :  { %v463_v24 = vadd.f32 %v431_v21, %v266_v14  ;;  %v114_v25 = vpop.permute.xlu1 %113  ;;  %v524_v26 = vpack.c.bf16 %v493_v18, %v492_v22 }
  0xae   :  { %v314_v30 = vpop.permute.xlu0 %313  ;;  %v235_v55 = vmul.f32 %v1374_v56, %v114_v25  ;;  %v238_v25 = vmul.f32 %v1374_v56, %v1361_v49 }
  0xaf   :  { %v495_v33 = vmax.f32 %v463_v24, 0.0  ;;  %v432_v34 = vmul.f32 %v1382_v59, %v314_v30  ;;  %990 = vmatprep.mubr.bf16.mxu0 %v524_v26 }
  0xb0   :  { %v273_v7 = vadd.f32 %v1387_v61, %v235_v55  ;;  %v276_v29 = vadd.f32 %v1387_v61, %v238_v25 }
  0xb1   :  { %v464_v36 = vadd.f32 %v432_v34, %v267_v31  ;;  %v119_v37 = vpop.permute.xlu1 %118  ;;  %v525_v38 = vpack.c.bf16 %v495_v33, %v494_v27 }
  0xb2   :  { %v326_v42 = vpop.permute.xlu0 %325  ;;  %v236_v47 = vmul.f32 %v1374_v56, %v119_v37 }
  0xb3   :  { %v496_v45 = vmax.f32 %v464_v36, 0.0  ;;  %v435_v46 = vmul.f32 %v1382_v59, %v326_v42  ;;  %991 = vmatmul.mubr.bf16.vlgmr.msra.gmra.mrb[0].mxu0 %v525_v38 }
  0xb4   :  { %v274_v8 = vadd.f32 %v1387_v61, %v236_v47 }
  0xb5   :  { %v467_v48 = vadd.f32 %v435_v46, %v270_v40  ;;  %v526_v50 = vpack.c.bf16 %v497_v43, %v496_v45 }
  0xb6   :  { %v334_v58 = vpop.permute.xlu1 %333  ;;  %v330_v60 = vpop.permute.xlu0 %329 }
  0xb7   :  { %v499_v0 = vmax.f32 %v467_v48, 0.0  ;;  %v437_v1 = vmul.f32 %v1382_v59, %v334_v58  ;;  %v436_v2 = vmul.f32 %v1382_v59, %v330_v60  ;;  %994 = vmatprep.mubr.bf16.mxu0 %v526_v50  ;;  %v242_v60 = vmul.f32 %v1374_v56, %v1363_v51 }
  0xb9   :  { %v469_v3 = vadd.f32 %v437_v1, %v272_v52  ;;  %v468_v4 = vadd.f32 %v436_v2, %v271_v62  ;;  %v527_v5 = vpack.c.bf16 %v499_v0, %v498_v54 }
  0xba   :  { %v338_v9 = vpop.permute.xlu1 %337  ;;  %v342_v10 = vpop.permute.xlu0 %341 }
  0xbb   :  { %v501_v11 = vmax.f32 %v469_v3, 0.0  ;;  %v500_v12 = vmax.f32 %v468_v4, 0.0  ;;  %v438_v13 = vmul.f32 %v1382_v59, %v338_v9  ;;  %v439_v6 = vmul.f32 %v1382_v59, %v342_v10  ;;  %995 = vmatmul.mubr.bf16.gmra.mrb[4].mxu0 %v527_v5 }
  0xbc   :  { %v280_v3 = vadd.f32 %v1387_v61, %v242_v60 }
  0xbd   :  { %v470_v14 = vadd.f32 %v438_v13, %v273_v7  ;;  %v471_v15 = vadd.f32 %v439_v6, %v274_v8  ;;  %v528_v16 = vpack.c.bf16 %v501_v11, %v500_v12 }
  0xbe   :  { %v346_v23 = vpop.permute.xlu0 %345 }
  0xbf   :  { %v502_v17 = vmax.f32 %v470_v14, 0.0  ;;  %v503_v18 = vmax.f32 %v471_v15, 0.0  ;;  %v124_v19 = vpop.permute.xlu1 %123  ;;  %998 = vmatprep.mubr.bf16.mxu0 %v528_v16  ;;  %v440_v26 = vmul.f32 %v1382_v59, %v346_v23 }
  0xc0   :  { %v237_v22 = vmul.f32 %v1374_v56, %v124_v19 }
  0xc1   :  { %v529_v20 = vpack.c.bf16 %v503_v18, %v502_v17 }
  0xc2   :  { %v275_v27 = vadd.f32 %v1387_v61, %v237_v22  ;;  %v358_v31 = vpop.permute.xlu0 %357 }
  0xc3   :  { %v134_v21 = vpop.permute.xlu1 %133  ;;  %999 = vmatmul.mubr.bf16.gmra.mrb[8].mxu0 %v529_v20  ;;  %v443_v33 = vmul.f32 %v1382_v59, %v358_v31 }
  0xc4   :  { %v472_v30 = vadd.f32 %v440_v26, %v275_v27  ;;  %v239_v34 = vmul.f32 %v1374_v56, %v134_v21  ;;  %v246_v26 = vmul.f32 %v1374_v56, %v1366_v53 }
  0xc6   :  { %v504_v37 = vmax.f32 %v472_v30, 0.0  ;;  %v277_v39 = vadd.f32 %v1387_v61, %v239_v34  ;;  %v362_v47 = vpop.permute.xlu0 %361  ;;  %v284_v31 = vadd.f32 %v1387_v61, %v246_v26 }
  0xc7   :  { %v139_v24 = vpop.permute.xlu1 %138  ;;  %v444_v0 = vmul.f32 %v1382_v59, %v362_v47 }
  0xc8   :  { %v240_v28 = vmul.f32 %v1374_v56, %v139_v24 }
  0xca   :  { %v278_v35 = vadd.f32 %v1387_v61, %v240_v28  ;;  %v374_v8 = vpop.permute.xlu0 %373 }
  0xcb   :  { %v447_v9 = vmul.f32 %v1382_v59, %v374_v8 }
  0xcc   :  { %v350_v32 = vpop.permute.xlu1 %349  ;;  %v475_v40 = vadd.f32 %v443_v33, %v278_v35 }
  0xcd   :  { %v441_v36 = vmul.f32 %v1382_v59, %v350_v32 }
  0xce   :  { %v507_v45 = vmax.f32 %v475_v40, 0.0  ;;  %v378_v24 = vpop.permute.xlu0 %377 }
  0xcf   :  { %v473_v49 = vadd.f32 %v441_v36, %v276_v29  ;;  %v448_v28 = vmul.f32 %v1382_v59, %v378_v24  ;;  %v254_v24 = vmul.f32 %v1374_v56, %v1390_v63 }
  0xd0   :  { %v354_v38 = vpop.permute.xlu1 %353 }
  0xd1   :  { %v505_v41 = vmax.f32 %v473_v49, 0.0  ;;  %v442_v42 = vmul.f32 %v1382_v59, %v354_v38 }
  0xd2   :  { %v390_v35 = vpop.permute.xlu0 %389 }
  0xd3   :  { %v474_v43 = vadd.f32 %v442_v42, %v277_v39  ;;  %v530_v44 = vpack.c.bf16 %v505_v41, %v504_v37  ;;  %v451_v36 = vmul.f32 %v1382_v59, %v390_v35 }
  0xd5   :  { %v506_v46 = vmax.f32 %v474_v43, 0.0  ;;  %v144_v48 = vpop.permute.xlu1 %143  ;;  %1002 = vmatprep.mubr.bf16.mxu0 %v530_v44 }
  0xd6   :  { %v241_v54 = vmul.f32 %v1374_v56, %v144_v48 }
  0xd7   :  { %v531_v50 = vpack.c.bf16 %v507_v45, %v506_v46 }
  0xd8   :  { %v279_v58 = vadd.f32 %v1387_v61, %v241_v54  ;;  %v394_v54 = vpop.permute.xlu0 %393 }
  0xd9   :  { %v154_v52 = vpop.permute.xlu1 %153  ;;  %1003 = vmatmul.mubr.bf16.gmra.mrb[12].mxu0 %v531_v50 }
  0xda   :  { %v476_v1 = vadd.f32 %v444_v0, %v279_v58  ;;  %v243_v4 = vmul.f32 %v1374_v56, %v154_v52  ;;  %v250_v58 = vmul.f32 %v1374_v56, %v1376_v57 }
  0xdc   :  { %v508_v11 = vmax.f32 %v476_v1, 0.0  ;;  %v281_v12 = vadd.f32 %v1387_v61, %v243_v4  ;;  %v406_v0 = vpop.permute.xlu0 %405 }
  0xdd   :  { %v159_v55 = vpop.permute.xlu1 %158  ;;  %v455_v8 = vmul.f32 %v1382_v59, %v406_v0 }
  0xde   :  { %v244_v62 = vmul.f32 %v1374_v56, %v159_v55 }
  0xe0   :  { %v282_v5 = vadd.f32 %v1387_v61, %v244_v62  ;;  %v452_v62 = vmul.f32 %v1382_v59, %v394_v54 }
  0xe2   :  { %v366_v2 = vpop.permute.xlu1 %365  ;;  %v479_v13 = vadd.f32 %v447_v9, %v282_v5 }
  0xe3   :  { %v445_v7 = vmul.f32 %v1382_v59, %v366_v2 }
  0xe4   :  { %v511_v17 = vmax.f32 %v479_v13, 0.0 }
  0xe5   :  { %v477_v10 = vadd.f32 %v445_v7, %v280_v3  ;;  %v288_v3 = vadd.f32 %v1387_v61, %v250_v58 }
  0xe6   :  { %v370_v51 = vpop.permute.xlu1 %369 }
  0xe7   :  { %v509_v6 = vmax.f32 %v477_v10, 0.0  ;;  %v446_v14 = vmul.f32 %v1382_v59, %v370_v51 }
  0xe9   :  { %v478_v15 = vadd.f32 %v446_v14, %v281_v12  ;;  %v532_v16 = vpack.c.bf16 %v509_v6, %v508_v11 }
  0xeb   :  { %v510_v18 = vmax.f32 %v478_v15, 0.0  ;;  %v164_v19 = vpop.permute.xlu1 %163  ;;  %1006 = vmatprep.mubr.bf16.mxu0 %v532_v16 }
  0xec   :  { %v245_v22 = vmul.f32 %v1374_v56, %v164_v19 }
  0xed   :  { %v533_v20 = vpack.c.bf16 %v511_v17, %v510_v18 }
  0xee   :  { %v283_v25 = vadd.f32 %v1387_v61, %v245_v22 }
  0xef   :  { %v174_v21 = vpop.permute.xlu1 %173  ;;  %1007 = vmatmul.mubr.bf16.gmra.mrb[16].mxu0 %v533_v20 }
  0xf0   :  { %v480_v29 = vadd.f32 %v448_v28, %v283_v25  ;;  %v247_v32 = vmul.f32 %v1374_v56, %v174_v21  ;;  %v410_v21 = vpop.permute.xlu0 %409 }
  0xf1   :  { %v456_v26 = vmul.f32 %v1382_v59, %v410_v21 }
  0xf2   :  { %v512_v37 = vmax.f32 %v480_v29, 0.0  ;;  %v285_v38 = vadd.f32 %v1387_v61, %v247_v32 }
  0xf3   :  { %v179_v23 = vpop.permute.xlu1 %178 }
  0xf4   :  { %v248_v27 = vmul.f32 %v1374_v56, %v179_v23 }
  0xf6   :  { %v286_v33 = vadd.f32 %v1387_v61, %v248_v27  ;;  %v422_v27 = vpop.permute.xlu0 %421 }
  0xf8   :  { %v382_v30 = vpop.permute.xlu1 %381  ;;  %v483_v39 = vadd.f32 %v451_v36, %v286_v33 }
  0xf9   :  { %v449_v34 = vmul.f32 %v1382_v59, %v382_v30  ;;  %v292_v30 = vadd.f32 %v1387_v61, %v254_v24 }
  0xfa   :  { %v515_v44 = vmax.f32 %v483_v39, 0.0 }
  0xfb   :  { %v481_v49 = vadd.f32 %v449_v34, %v284_v31  ;;  %v459_v34 = vmul.f32 %v1382_v59, %v422_v27 }
  0xfc   :  { %v386_v53 = vpop.permute.xlu1 %385 }
  0xfd   :  { %v513_v40 = vmax.f32 %v481_v49, 0.0  ;;  %v450_v41 = vmul.f32 %v1382_v59, %v386_v53 }
  0xff   :  { %v482_v42 = vadd.f32 %v450_v41, %v285_v38  ;;  %v534_v43 = vpack.c.bf16 %v513_v40, %v512_v37 }
 0x101   :  { %v514_v45 = vmax.f32 %v482_v42, 0.0  ;;  %v184_v46 = vpop.permute.xlu1 %183  ;;  %1010 = vmatprep.mubr.bf16.mxu0 %v534_v43 }
 0x102   :  { %v249_v52 = vmul.f32 %v1374_v56, %v184_v46 }
 0x103   :  { %v535_v48 = vpack.c.bf16 %v515_v44, %v514_v45 }
 0x104   :  { %v287_v47 = vadd.f32 %v1387_v61, %v249_v52 }
 0x105   :  { %v194_v50 = vpop.permute.xlu1 %193  ;;  %1011 = vmatmul.mubr.bf16.gmra.mrb[20].mxu0 %v535_v48 }
 0x106   :  { %v484_v1 = vadd.f32 %v452_v62, %v287_v47  ;;  %v251_v4 = vmul.f32 %v1374_v56, %v194_v50 }
 0x108   :  { %v516_v10 = vmax.f32 %v484_v1, 0.0  ;;  %v289_v11 = vadd.f32 %v1387_v61, %v251_v4  ;;  %v1513_v1 = vld [vmem:[%s1571_s4] ss:$0 sm:$0xff] }
 0x109   :  { %v199_v55 = vpop.permute.xlu1 %198 }
 0x10a   :  { %v252_v60 = vmul.f32 %v1374_v56, %v199_v55 }
 0x10c   :  { %v290_v5 = vadd.f32 %v1387_v61, %v252_v60 }
 0x10e   :  { %v398_v2 = vpop.permute.xlu1 %397  ;;  %v487_v51 = vadd.f32 %v455_v8, %v290_v5 }
 0x10f   :  { %v453_v7 = vmul.f32 %v1382_v59, %v398_v2 }
 0x110   :  { %v519_v15 = vmax.f32 %v487_v51, 0.0 }
 0x111   :  { %v485_v9 = vadd.f32 %v453_v7, %v288_v3 }
 0x112   :  { %v402_v57 = vpop.permute.xlu1 %401 }
 0x113   :  { %v517_v12 = vmax.f32 %v485_v9, 0.0  ;;  %v454_v13 = vmul.f32 %v1382_v59, %v402_v57 }
 0x115   :  { %v486_v6 = vadd.f32 %v454_v13, %v289_v11  ;;  %v536_v14 = vpack.c.bf16 %v517_v12, %v516_v10 }
 0x117   :  { %v518_v16 = vmax.f32 %v486_v6, 0.0  ;;  %v204_v17 = vpop.permute.xlu1 %203  ;;  %1014 = vmatprep.mubr.bf16.mxu0 %v536_v14 }
 0x118   :  { %v253_v20 = vmul.f32 %v1374_v56, %v204_v17 }
 0x119   :  { %v537_v18 = vpack.c.bf16 %v519_v15, %v518_v16 }
 0x11a   :  { %v291_v23 = vadd.f32 %v1387_v61, %v253_v20 }
 0x11b   :  { %v214_v19 = vpop.permute.xlu1 %213  ;;  %1015 = vmatmul.mubr.bf16.gmra.mrb[24].mxu0 %v537_v18 }
 0x11c   :  { %v488_v28 = vadd.f32 %v456_v26, %v291_v23  ;;  %v255_v31 = vmul.f32 %v1374_v56, %v214_v19 }
 0x11e   :  { %v520_v36 = vmax.f32 %v488_v28, 0.0  ;;  %v293_v49 = vadd.f32 %v1387_v61, %v255_v31 }
 0x11f   :  { %v219_v22 = vpop.permute.xlu1 %218 }
 0x120   :  { %v256_v25 = vmul.f32 %v1374_v56, %v219_v22 }
 0x122   :  { %v294_v32 = vadd.f32 %v1387_v61, %v256_v25 }
 0x124   :  { %v414_v29 = vpop.permute.xlu1 %413  ;;  %v491_v37 = vadd.f32 %v459_v34, %v294_v32 }
 0x125   :  { %v457_v33 = vmul.f32 %v1382_v59, %v414_v29 }
 0x126   :  { %v523_v41 = vmax.f32 %v491_v37, 0.0 }
 0x127   :  { %v489_v35 = vadd.f32 %v457_v33, %v292_v30 }
 0x128   :  { %v418_v63 = vpop.permute.xlu1 %417 }
 0x129   :  { %v521_v53 = vmax.f32 %v489_v35, 0.0  ;;  %v458_v38 = vmul.f32 %v1382_v59, %v418_v63 }
 0x12b   :  { %v490_v39 = vadd.f32 %v458_v38, %v293_v49  ;;  %v538_v40 = vpack.c.bf16 %v521_v53, %v520_v36 }
 0x12d   :  { %v522_v42 = vmax.f32 %v490_v39, 0.0  ;;  %1018 = vmatprep.mubr.bf16.mxu0 %v538_v40 }
 0x12f   :  { %v539_v56 = vpack.c.bf16 %v523_v41, %v522_v42 }
 0x131   :  { %1019 = vmatmul.mubr.bf16.gmra.mrb[28].mxu0 %v539_v56 }
 0x186   :  { %v992_v43 = vpop.f32.mrb[0].mxu0 }
 0x187   :  { %v645_v44 = vpop.f32.mrb[1].mxu0  ;;  %v654_v2 = vadd.f32 %v992_v43, %v1513_v1 }
 0x188   :  { %v993_v45 = vpop.f32.mrb[2].mxu0  ;;  %v646_v3 = vadd.f32 %v1513_v1, %v645_v44 }
 0x189   :  { %v648_v46 = vpop.f32.mrb[3].mxu0  ;;  %v657_v5 = vadd.f32 %v993_v45, %v1513_v1  ;;  %v774_v11 = vmax.f32 %v654_v2, 0.0 }
 0x18a   :  { %v649_v9 = vadd.f32 %v1513_v1, %v648_v46  ;;  %v772_v6 = vmax.f32 %v646_v3, 0.0 }
 0x18b   :  { %v775_v16 = vmax.f32 %v657_v5, 0.0 }
 0x18c   :  { %v773_v19 = vmax.f32 %v649_v9, 0.0 }
 0x18e   :  { %v996_v48 = vpop.f32.mrb[4].mxu0 }
 0x18f   :  { %v661_v50 = vpop.f32.mrb[5].mxu0  ;;  %v670_v24 = vadd.f32 %v996_v48, %v1513_v1 }
 0x190   :  { %v997_v52 = vpop.f32.mrb[6].mxu0  ;;  %v662_v25 = vadd.f32 %v1513_v1, %v661_v50 }
 0x191   :  { %v664_v54 = vpop.f32.mrb[7].mxu0  ;;  %v673_v27 = vadd.f32 %v997_v52, %v1513_v1  ;;  %v778_v33 = vmax.f32 %v670_v24, 0.0 }
 0x192   :  { %v665_v30 = vadd.f32 %v1513_v1, %v664_v54  ;;  %v776_v63 = vmax.f32 %v662_v25, 0.0 }
 0x193   :  { %v779_v53 = vmax.f32 %v673_v27, 0.0 }
 0x194   :  { %v777_v40 = vmax.f32 %v665_v30, 0.0 }
 0x196   :  { %v1494_v61 = vpop.f32.mrb[8].mxu0 }
 0x197   :  { %v1496_v55 = vpop.f32.mrb[9].mxu0  ;;  %v686_v44 = vadd.f32 %v1494_v61, %v1513_v1 }
 0x198   :  { %v1498_v59 = vpop.f32.mrb[10].mxu0  ;;  %v678_v45 = vadd.f32 %v1513_v1, %v1496_v55 }
 0x199   :  { %v1500_v47 = vpop.f32.mrb[11].mxu0  ;;  %v689_v48 = vadd.f32 %v1498_v59, %v1513_v1 }
 0x19a   :  { %v681_v54 = vadd.f32 %v1513_v1, %v1500_v47 }
 0x1ac   :  { %v1502_v58 = vpop.f32.mrb[12].mxu0 }
 0x1ad   :  { %v1504_v60 = vpop.f32.mrb[13].mxu0 }
 0x1ae   :  { %v1506_v62 = vpop.f32.mrb[14].mxu0 }
 0x1af   :  { %v1508_v0 = vpop.f32.mrb[15].mxu0 }
 0x1c2   :  { %v1008_v4 = vpop.f32.mrb[16].mxu0 }
 0x1c3   :  { %v718_v7 = vadd.f32 %v1008_v4, %v1513_v1  ;;  %v709_v8 = vpop.f32.mrb[17].mxu0  ;;  %v782_v4 = vmax.f32 %v686_v44, 0.0 }
 0x1c4   :  { %v710_v10 = vadd.f32 %v1513_v1, %v709_v8  ;;  %v1009_v57 = vpop.f32.mrb[18].mxu0  ;;  %v780_v8 = vmax.f32 %v678_v45, 0.0 }
 0x1c5   :  { %v790_v51 = vmax.f32 %v718_v7, 0.0  ;;  %v721_v12 = vadd.f32 %v1009_v57, %v1513_v1  ;;  %v712_v13 = vpop.f32.mrb[19].mxu0 }
 0x1c6   :  { %v788_v14 = vmax.f32 %v710_v10, 0.0  ;;  %v713_v15 = vadd.f32 %v1513_v1, %v712_v13  ;;  %v783_v10 = vmax.f32 %v689_v48, 0.0 }
 0x1c7   :  { %v1046_v17 = vpack.i.bf16 %v774_v11, %v790_v51  ;;  %v791_v18 = vmax.f32 %v721_v12, 0.0  ;;  %v781_v11 = vmax.f32 %v681_v54, 0.0 }
 0x1c8   :  { %v1042_v20 = vpack.i.bf16 %v772_v6, %v788_v14  ;;  %v789_v21 = vmax.f32 %v713_v15, 0.0  ;;  %v702_v6 = vadd.f32 %v1502_v58, %v1513_v1  ;;  %v694_v14 = vadd.f32 %v1513_v1, %v1504_v60 }
 0x1c9   :  { %v1048_v22 = vpack.i.bf16 %v775_v16, %v791_v18  ;;  %v705_v16 = vadd.f32 %v1506_v62, %v1513_v1 }
 0x1ca   :  { %v1044_v23 = vpack.i.bf16 %v773_v19, %v789_v21  ;;  %1043 = vxpose.xlu1.b32.start [1/16] %v1042_v20, 128  ;;  %v697_v19 = vadd.f32 %v1513_v1, %v1508_v0  ;;  %v784_v25 = vmax.f32 %v694_v14, 0.0 }
 0x1cb   :  { %v787_v27 = vmax.f32 %v705_v16, 0.0 }
 0x1ce   :  { %1045 = vxpose.xlu1.b32.cont [2/16] %v1044_v23, 128 }
 0x1d2   :  { %1047 = vxpose.xlu1.b32.cont [3/16] %v1046_v17, 128 }
 0x1d6   :  { %1049 = vxpose.xlu1.b32.cont [4/16] %v1048_v22, 128  ;;  %v786_v22 = vmax.f32 %v702_v6, 0.0 }
 0x1d8   :  { %v1012_v26 = vpop.f32.mrb[20].mxu0 }
 0x1d9   :  { %v734_v28 = vadd.f32 %v1012_v26, %v1513_v1  ;;  %v725_v29 = vpop.f32.mrb[21].mxu0 }
 0x1da   :  { %v726_v31 = vadd.f32 %v1513_v1, %v725_v29  ;;  %v1013_v32 = vpop.f32.mrb[22].mxu0  ;;  %v785_v29 = vmax.f32 %v697_v19, 0.0 }
 0x1db   :  { %v794_v34 = vmax.f32 %v734_v28, 0.0  ;;  %v737_v35 = vadd.f32 %v1013_v32, %v1513_v1  ;;  %v728_v36 = vpop.f32.mrb[23].mxu0 }
 0x1dc   :  { %v792_v49 = vmax.f32 %v726_v31, 0.0  ;;  %v729_v37 = vadd.f32 %v1513_v1, %v728_v36 }
 0x1dd   :  { %v1054_v38 = vpack.i.bf16 %v778_v33, %v794_v34  ;;  %v795_v39 = vmax.f32 %v737_v35, 0.0  ;;  %v885_v33 = vld [vmem:[%s1572_s6] sm:$0xff] }
 0x1de   :  { %v1050_v41 = vpack.i.bf16 %v776_v63, %v792_v49  ;;  %v793_v42 = vmax.f32 %v729_v37, 0.0  ;;  %888 = vperm.xlu0 %1154, %v885_v33  }
 0x1df   :  { %v1056_v56 = vpack.i.bf16 %v779_v53, %v795_v39 }
 0x1e0   :  { %v1052_v43 = vpack.i.bf16 %v777_v40, %v793_v42  ;;  %1051 = vxpose.xlu1.b32.cont [5/16] %v1050_v41, 128 }
 0x1e4   :  { %1053 = vxpose.xlu1.b32.cont [6/16] %v1052_v43, 128 }
 0x1e8   :  { %1055 = vxpose.xlu1.b32.cont [7/16] %v1054_v38, 128 }
 0x1ec   :  { %1057 = vxpose.xlu1.b32.cont [8/16] %v1056_v56, 128 }
 0x1ee   :  { %v1016_v46 = vpop.f32.mrb[24].mxu0 }
 0x1ef   :  { %v750_v50 = vadd.f32 %v1016_v46, %v1513_v1  ;;  %v741_v52 = vpop.f32.mrb[25].mxu0 }
 0x1f0   :  { %v742_v2 = vadd.f32 %v1513_v1, %v741_v52  ;;  %v1017_v3 = vpop.f32.mrb[26].mxu0 }
 0x1f1   :  { %v798_v5 = vmax.f32 %v750_v50, 0.0  ;;  %v753_v61 = vadd.f32 %v1017_v3, %v1513_v1  ;;  %v744_v7 = vpop.f32.mrb[27].mxu0 }
 0x1f2   :  { %v796_v55 = vmax.f32 %v742_v2, 0.0  ;;  %v745_v9 = vadd.f32 %v1513_v1, %v744_v7 }
 0x1f3   :  { %v1062_v59 = vpack.i.bf16 %v782_v4, %v798_v5  ;;  %v799_v57 = vmax.f32 %v753_v61, 0.0 }
 0x1f4   :  { %v1058_v51 = vpack.i.bf16 %v780_v8, %v796_v55  ;;  %v797_v12 = vmax.f32 %v745_v9, 0.0 }
 0x1f5   :  { %v1064_v13 = vpack.i.bf16 %v783_v10, %v799_v57 }
 0x1f6   :  { %v1060_v47 = vpack.i.bf16 %v781_v11, %v797_v12  ;;  %1059 = vxpose.xlu1.b32.cont [9/16] %v1058_v51, 128 }
 0x1fa   :  { %1061 = vxpose.xlu1.b32.cont [10/16] %v1060_v47, 128 }
 0x1fe   :  { %1063 = vxpose.xlu1.b32.cont [11/16] %v1062_v59, 128 }
 0x202   :  { %1065 = vxpose.xlu1.b32.cont [12/16] %v1064_v13, 128 }
 0x204   :  { %v1020_v15 = vpop.f32.mrb[28].mxu0 }
 0x205   :  { %v766_v17 = vadd.f32 %v1020_v15, %v1513_v1  ;;  %v757_v18 = vpop.f32.mrb[29].mxu0 }
 0x206   :  { %v758_v20 = vadd.f32 %v1513_v1, %v757_v18  ;;  %v1021_v21 = vpop.f32.mrb[30].mxu0 }
 0x207   :  { %v802_v23 = vmax.f32 %v766_v17, 0.0  ;;  %v769_v58 = vadd.f32 %v1021_v21, %v1513_v1  ;;  %v760_v24 = vpop.f32.mrb[31].mxu0 }
 0x208   :  { %v800_v60 = vmax.f32 %v758_v20, 0.0  ;;  %v761_v26 = vadd.f32 %v1513_v1, %v760_v24 }
 0x209   :  { %v1070_v62 = vpack.i.bf16 %v786_v22, %v802_v23  ;;  %v803_v28 = vmax.f32 %v769_v58, 0.0 }
 0x20a   :  { %v1066_v30 = vpack.i.bf16 %v784_v25, %v800_v60  ;;  %v801_v31 = vmax.f32 %v761_v26, 0.0 }
 0x20b   :  { %v1072_v32 = vpack.i.bf16 %v787_v27, %v803_v28 }
 0x20c   :  { %v1068_v0 = vpack.i.bf16 %v785_v29, %v801_v31  ;;  %1067 = vxpose.xlu1.b32.cont [13/16] %v1066_v30, 128 }
 0x210   :  { %1069 = vxpose.xlu1.b32.cont [14/16] %v1068_v0, 128 }
 0x214   :  { %1071 = vxpose.xlu1.b32.cont [15/16] %v1070_v62, 128 }
 0x218   :  { %1073 = vxpose.xlu1.b32.end [16/16] %v1072_v32, 128 }
 0x25c   :  { %v1074_v34 = vpop.trf.xlu1 }
 0x25d   :  { %v1075_v1 = vunpack.i.l.bf16 %v1074_v34  ;;  %v1078_v36 = vunpack.i.h.bf16 %v1074_v34  ;;  %v804_v34 = vld [vmem:[%s1573_s5] sm:$0xf] }
 0x260   :  { %v1079_v35 = vpop.trf.xlu1 }
 0x261   :  { %v1080_v63 = vunpack.i.l.bf16 %v1079_v35  ;;  %v1083_v49 = vunpack.i.h.bf16 %v1079_v35  ;;  %v889_v35 = vpop.permute.xlu0 %888 }
 0x263   :  { %v870_v37 = vpack.c.bf16 %v1080_v63, %v1075_v1  ;;  %v869_v53 = vpack.c.bf16 %v1083_v49, %v1078_v36 }
 0x264   :  { %v1084_v38 = vpop.trf.xlu1 }
 0x265   :  { %891 = vmatprep.subr.bf16.mxu1 %v870_v37  ;;  %v1088_v39 = vunpack.i.h.bf16 %v1084_v38  ;;  %v1085_v40 = vunpack.i.l.bf16 %v1084_v38 }
 0x266   :  { %892 = vmatpush1.bf16.msra.mxu1 %v869_v53 }
 0x268   :  { %v1089_v41 = vpop.trf.xlu1 }
 0x269   :  { %v1093_v42 = vunpack.i.h.bf16 %v1089_v41  ;;  %v1090_v56 = vunpack.i.l.bf16 %v1089_v41 }
 0x26b   :  { %v872_v43 = vpack.c.bf16 %v1090_v56, %v1085_v40  ;;  %v871_v44 = vpack.c.bf16 %v1093_v42, %v1088_v39 }
 0x26c   :  { %v1094_v45 = vpop.trf.xlu1 }
 0x26d   :  { %893 = vmatprep.subr.bf16.mxu1 %v872_v43  ;;  %v1098_v46 = vunpack.i.h.bf16 %v1094_v45  ;;  %v1095_v48 = vunpack.i.l.bf16 %v1094_v45 }
 0x26e   :  { %894 = vmatpush1.bf16.msra.mxu1 %v871_v44 }
 0x270   :  { %v1099_v50 = vpop.trf.xlu1 }
 0x271   :  { %v1103_v52 = vunpack.i.h.bf16 %v1099_v50  ;;  %v1100_v54 = vunpack.i.l.bf16 %v1099_v50 }
 0x273   :  { %v874_v2 = vpack.c.bf16 %v1100_v54, %v1095_v48  ;;  %v873_v3 = vpack.c.bf16 %v1103_v52, %v1098_v46 }
 0x274   :  { %v1104_v4 = vpop.trf.xlu1 }
 0x275   :  { %895 = vmatprep.subr.bf16.mxu1 %v874_v2  ;;  %v1108_v5 = vunpack.i.h.bf16 %v1104_v4  ;;  %v1105_v61 = vunpack.i.l.bf16 %v1104_v4 }
 0x276   :  { %896 = vmatpush1.bf16.msra.mxu1 %v873_v3 }
 0x278   :  { %v1109_v7 = vpop.trf.xlu1 }
 0x279   :  { %v1113_v8 = vunpack.i.h.bf16 %v1109_v7  ;;  %v1110_v55 = vunpack.i.l.bf16 %v1109_v7 }
 0x27b   :  { %v876_v9 = vpack.c.bf16 %v1110_v55, %v1105_v61  ;;  %v875_v10 = vpack.c.bf16 %v1113_v8, %v1108_v5 }
 0x27c   :  { %v1114_v59 = vpop.trf.xlu1 }
 0x27d   :  { %897 = vmatprep.subr.bf16.mxu1 %v876_v9  ;;  %v1118_v57 = vunpack.i.h.bf16 %v1114_v59  ;;  %v1115_v11 = vunpack.i.l.bf16 %v1114_v59 }
 0x27e   :  { %898 = vmatpush1.bf16.msra.mxu1 %v875_v10 }
 0x280   :  { %v1119_v51 = vpop.trf.xlu1 }
 0x281   :  { %v1123_v12 = vunpack.i.h.bf16 %v1119_v51  ;;  %v1120_v13 = vunpack.i.l.bf16 %v1119_v51 }
 0x283   :  { %v878_v47 = vpack.c.bf16 %v1120_v13, %v1115_v11  ;;  %v877_v6 = vpack.c.bf16 %v1123_v12, %v1118_v57 }
 0x284   :  { %v1124_v14 = vpop.trf.xlu1 }
 0x285   :  { %899 = vmatprep.subr.bf16.mxu1 %v878_v47  ;;  %v1128_v15 = vunpack.i.h.bf16 %v1124_v14  ;;  %v1125_v16 = vunpack.i.l.bf16 %v1124_v14 }
 0x286   :  { %900 = vmatpush1.bf16.msra.mxu1 %v877_v6 }
 0x288   :  { %v1129_v17 = vpop.trf.xlu1 }
 0x289   :  { %v1133_v18 = vunpack.i.h.bf16 %v1129_v17  ;;  %v1130_v19 = vunpack.i.l.bf16 %v1129_v17 }
 0x28b   :  { %v880_v20 = vpack.c.bf16 %v1130_v19, %v1125_v16  ;;  %v879_v21 = vpack.c.bf16 %v1133_v18, %v1128_v15 }
 0x28c   :  { %v1134_v22 = vpop.trf.xlu1 }
 0x28d   :  { %901 = vmatprep.subr.bf16.mxu1 %v880_v20  ;;  %v1138_v23 = vunpack.i.h.bf16 %v1134_v22  ;;  %v1135_v58 = vunpack.i.l.bf16 %v1134_v22 }
 0x28e   :  { %902 = vmatpush1.bf16.msra.mxu1 %v879_v21 }
 0x290   :  { %v1139_v24 = vpop.trf.xlu1 }
 0x291   :  { %v1143_v25 = vunpack.i.h.bf16 %v1139_v24  ;;  %v1140_v60 = vunpack.i.l.bf16 %v1139_v24 }
 0x293   :  { %v882_v26 = vpack.c.bf16 %v1140_v60, %v1135_v58  ;;  %v881_v27 = vpack.c.bf16 %v1143_v25, %v1138_v23 }
 0x294   :  { %v1144_v62 = vpop.trf.xlu1 }
 0x295   :  { %903 = vmatprep.subr.bf16.mxu1 %v882_v26  ;;  %v1148_v28 = vunpack.i.h.bf16 %v1144_v62  ;;  %v1145_v29 = vunpack.i.l.bf16 %v1144_v62 }
 0x296   :  { %904 = vmatpush1.bf16.msra.mxu1 %v881_v27 }
 0x298   :  { %v1149_v30 = vpop.trf.xlu1 }
 0x299   :  { %v1153_v31 = vunpack.i.h.bf16 %v1149_v30  ;;  %v1150_v32 = vunpack.i.l.bf16 %v1149_v30 }
 0x29b   :  { %v884_v0 = vpack.c.bf16 %v1150_v32, %v1145_v29  ;;  %v883_v33 = vpack.c.bf16 %v1153_v31, %v1148_v28 }
 0x29d   :  { %905 = vmatprep.subr.bf16.mxu1 %v884_v0 }
 0x29e   :  { %906 = vmatpush1.bf16.msra.mxu1 %v883_v33 }
 0x2a1   :  { %924 = vmatmul.mubr.bf16.vlgmr.msra.gmra.mrb[0].mxu1 %v804_v34 }
 0x374   :  { %v925_v1 = vpop.f32.mrb[0].mxu1 }
 0x375   :  { %v926_v36 = vadd.f32 %v925_v1, %v889_v35  ;;  %v927_v63 = vpop.f32.mrb[1].mxu1 }
 0x376   :  { %v928_v49 = vadd.f32 %v927_v63, %v889_v35  ;;  %v929_v37 = vpop.f32.mrb[2].mxu1 }
 0x377   :  { %932 = vst [vmem:[%s1574_s7] sm:$0xff] %v926_v36  ;;  %v930_v53 = vpop.f32.mrb[3].mxu1 }
 0x378   :  { %933 = vst [vmem:[%s1574_s7 + $0x8] sm:$0xff] %v928_v49 }

</bundles_post_ra>
